<compile_context>
chip_gen: v7x
topology: tpu7x:2x2x1
jax: 0.10.0
libtpu: 0.0.40
codegen_flags: <defaults>
</compile_context>

<pallas_src>
import functools

import jax
import jax.numpy as jnp
from jax.experimental import pallas as pl
from jax.experimental.pallas import tpu as pltpu


def _round_up(x, m):
    return ((x + m - 1) // m) * m


def _mlp_kernel(num_hidden, compute_dtype, x_ref, *refs):
    """Fused MLP forward.

    refs layout:
      [w_in, b_in, (w_h0, b_h0), ..., (w_h{num_hidden-1}, b_h{num_hidden-1}),
       w_out, b_out, o_ref]
    """
    o_ref = refs[-1]
    p = refs[:-1]

    w_in, b_in = p[0], p[1]
    # layer_input: Linear only, NO activation (matches the PyTorch forward).
    h = jnp.dot(x_ref[...].astype(compute_dtype), w_in[...],
                preferred_element_type=jnp.float32) + b_in[...]

    # hidden layers: Linear -> ReLU (dropout p=0 is identity).
    idx = 2
    for _ in range(num_hidden):
        w, b = p[idx], p[idx + 1]
        idx += 2
        h = jnp.dot(h.astype(compute_dtype), w[...],
                    preferred_element_type=jnp.float32) + b[...]
        h = jnp.maximum(h, 0.0)

    w_out, b_out = p[idx], p[idx + 1]
    out = jnp.dot(h.astype(compute_dtype), w_out[...],
                  preferred_element_type=jnp.float32) + b_out[...]
    # use_softmax == False -> raw logits.
    o_ref[...] = out.astype(o_ref.dtype)


def prepare_params(params, *, compute_dtype=jnp.bfloat16, lane=128):
    """One-time padding + cast of the flat param list [w, b, w, b, ...].

    * weights -> bf16; biases stay f32 (bias-add / ReLU done in f32 in-kernel).
    * output (N) dims padded to a lane multiple for lane-dense matmuls/stores.
    * the FIRST weight keeps its K (row) dim unpadded so it matches unpadded x;
      later weights pad K to match the previous layer's padded output lanes.
    Zero padding is exact: padded bias lanes are 0, ReLU(0)=0, padded weight
    rows are 0.
    """
    prepared = []
    n_layers = len(params) // 2
    for li in range(n_layers):
        w, b = params[2 * li], params[2 * li + 1]
        d_in, d_out = w.shape
        d_in_p = d_in if li == 0 else _round_up(d_in, lane)
        d_out_p = _round_up(d_out, lane)
        w_p = jnp.pad(w, ((0, d_in_p - d_in), (0, d_out_p - d_out)))
        b_p = jnp.pad(b, ((0, 0), (0, d_out_p - b.shape[1])))
        prepared.append(w_p.astype(compute_dtype))
        prepared.append(b_p.astype(jnp.float32))
    return prepared


def mlp_forward(x, padded_params, output_size, *, block_m=None,
                compute_dtype=jnp.bfloat16, out_dtype=jnp.bfloat16):
    """x: (B, input_size) f32; padded_params: output of prepare_params."""
    B, in_features = x.shape
    assert padded_params[0].shape[0] == in_features
    num_hidden = (len(padded_params) - 4) // 2
    n_out_pad = padded_params[-1].shape[-1]

    # Batch tile: whole (rounded) batch for tiny B; for B >= 32 guarantee at
    # least 2 grid steps along the "parallel" axis (both v7x TCs), cap at 512.
    if block_m is None:
        b8 = _round_up(B, 8)
        if b8 >= 32:
            block_m = min(512, _round_up(pl.cdiv(b8, 2), 16))
        else:
            block_m = b8
    B_pad = _round_up(B, block_m)

    # Only pad the batch rows when strictly necessary (no K padding, no cast:
    # the bf16 cast of x happens inside the kernel).
    x_p = x if B_pad == B else jnp.pad(x, ((0, B_pad - B), (0, 0)))

    # x tiled over batch; every weight / bias block is the full array,
    # replicated across grid steps (index_map -> (0, 0)).
    in_specs = [pl.BlockSpec((block_m, in_features), lambda i: (i, 0))]
    in_specs += [pl.BlockSpec(p.shape, lambda i: (0, 0)) for p in padded_params]

    flops = 2 * B_pad * sum(
        padded_params[2 * li].shape[0] * padded_params[2 * li].shape[1]
        for li in range(len(padded_params) // 2))
    bytes_accessed = int(
        x_p.size * x_p.dtype.itemsize
        + sum(p.size * p.dtype.itemsize for p in padded_params)
        + B_pad * n_out_pad * jnp.dtype(out_dtype).itemsize)

    kernel = functools.partial(_mlp_kernel, num_hidden, compute_dtype)

    out = pl.pallas_call(
        kernel,
        out_shape=jax.ShapeDtypeStruct((B_pad, n_out_pad), out_dtype),
        grid=(B_pad // block_m,),
        in_specs=in_specs,
        out_specs=pl.BlockSpec((block_m, n_out_pad), lambda i: (i, 0)),
        compiler_params=pltpu.CompilerParams(
            dimension_semantics=("parallel",),
            vmem_limit_bytes=32 * 1024 * 1024),
        cost_estimate=pl.CostEstimate(flops=flops, transcendentals=0,
                                      bytes_accessed=bytes_accessed),
    )(x_p, *padded_params)

    # Strip batch + lane padding back to the module's true output shape.
    return out[:B, :output_size]


def init_params(key, input_size, hidden_layer, output_size):
    """Deterministic init matching nn.Linear default: U(-1/sqrt(in), 1/sqrt(in))."""
    dims = [input_size] + list(hidden_layer) + [output_size]
    params = []
    for d_in, d_out in zip(dims[:-1], dims[1:]):
        key, kw, kb = jax.random.split(key, 3)
        bound = 1.0 / jnp.sqrt(jnp.float32(d_in))
        w = jax.random.uniform(kw, (d_in, d_out), jnp.float32, -bound, bound)
        b = jax.random.uniform(kb, (1, d_out), jnp.float32, -bound, bound)
        params += [w, b]
    return params


def mlp_reference(x, params):
    """Pure-f32 reference of the PyTorch forward."""
    num_hidden = (len(params) - 4) // 2
    h = x @ params[0] + params[1]
    idx = 2
    for _ in range(num_hidden):
        h = h @ params[idx] + params[idx + 1]
        h = jnp.maximum(h, 0.0)
        idx += 2
    return h @ params[idx] + params[idx + 1]


def mlp_reference_lowp(x, params, dtype):
    """Reference emulating the kernel's low-precision matmul operands."""
    num_hidden = (len(params) - 4) // 2
    h = jnp.dot(x.astype(dtype), params[0].astype(dtype),
                preferred_element_type=jnp.float32) + params[1]
    idx = 2
    for _ in range(num_hidden):
        h = jnp.dot(h.astype(dtype), params[idx].astype(dtype),
                    preferred_element_type=jnp.float32) + params[idx + 1]
        h = jnp.maximum(h, 0.0)
        idx += 2
    return jnp.dot(h.astype(dtype), params[idx].astype(dtype),
                   preferred_element_type=jnp.float32) + params[idx + 1]


if __name__ == "__main__":
    # NN(input_size=32, hidden_layer=[64, 48], output_size=10)
    input_size, hidden_layer, output_size = 32, [64, 48], 10
    batch = 16

    key = jax.random.PRNGKey(0)
    key, kx = jax.random.split(key)
    x = jax.random.normal(kx, (batch, input_size), jnp.float32)
    params = init_params(key, input_size, hidden_layer, output_size)

    # One-time (cached) param preparation; reused across every forward call.
    padded_params = prepare_params(params)

    out = mlp_forward(x, padded_params, output_size)
    out = jax.block_until_ready(out)
    assert out.shape == (batch, output_size)
    out_f32 = out.astype(jnp.float32)

    # Tight check against a reference applying the same bf16 operand casts and
    # the final bf16 output cast.
    ref_lowp = mlp_reference_lowp(x, params, jnp.bfloat16)
    ref_lowp = ref_lowp.astype(jnp.bfloat16).astype(jnp.float32)
    assert jnp.allclose(out_f32, ref_lowp, atol=2e-2, rtol=2e-2)

    # Sanity check against the full-f32 PyTorch-equivalent forward
    # (tolerance relaxed for bf16 matmul operands + bf16 output).
    ref_f32 = mlp_reference(x, params)
    assert jnp.allclose(out_f32, ref_f32, atol=6e-2, rtol=6e-2)

    print("KERNEL_OK")
</pallas_src>

<mosaic_0001>
module attributes {stable_mosaic.version = 11 : i64} {
  func.func @_mlp_kernel(%arg0: i32, %arg1: memref<16x32xf32, #tpu.memory_space<vmem>>, %arg2: memref<32x128xbf16, #tpu.memory_space<vmem>>, %arg3: memref<1x128xf32, #tpu.memory_space<vmem>>, %arg4: memref<128x128xbf16, #tpu.memory_space<vmem>>, %arg5: memref<1x128xf32, #tpu.memory_space<vmem>>, %arg6: memref<128x128xbf16, #tpu.memory_space<vmem>>, %arg7: memref<1x128xf32, #tpu.memory_space<vmem>>, %arg8: memref<16x128xbf16, #tpu.memory_space<vmem>>) attributes {dimension_semantics = [#tpu.dimension_semantics<parallel>], iteration_bounds = array<i64: 1>, scalar_prefetch = 0 : i64, scratch_operands = 0 : i64, tpu.core_type = #tpu.core_type<tc>, window_params = [{transform_indices = @transform_0, window_bounds = array<i64: 16, 32>}, {pipeline_mode = #tpu.pipeline_mode<synchronous>, transform_indices = @transform_1, window_bounds = array<i64: 32, 128>}, {pipeline_mode = #tpu.pipeline_mode<synchronous>, transform_indices = @transform_2, window_bounds = array<i64: 1, 128>}, {pipeline_mode = #tpu.pipeline_mode<synchronous>, transform_indices = @transform_3, window_bounds = array<i64: 128, 128>}, {pipeline_mode = #tpu.pipeline_mode<synchronous>, transform_indices = @transform_4, window_bounds = array<i64: 1, 128>}, {pipeline_mode = #tpu.pipeline_mode<synchronous>, transform_indices = @transform_5, window_bounds = array<i64: 128, 128>}, {pipeline_mode = #tpu.pipeline_mode<synchronous>, transform_indices = @transform_6, window_bounds = array<i64: 1, 128>}, {transform_indices = @transform_7, window_bounds = array<i64: 16, 128>}]} {
    %c0 = arith.constant 0 : index
    %c0_0 = arith.constant 0 : index
    %0 = vector.load %arg1[%c0, %c0_0] : memref<16x32xf32, #tpu.memory_space<vmem>>, vector<16x32xf32>
    %1 = arith.truncf %0 : vector<16x32xf32> to vector<16x32xbf16>
    %c0_1 = arith.constant 0 : index
    %c0_2 = arith.constant 0 : index
    %2 = vector.load %arg2[%c0_1, %c0_2] : memref<32x128xbf16, #tpu.memory_space<vmem>>, vector<32x128xbf16>
    %cst = arith.constant dense<0.000000e+00> : vector<16x128xf32>
    %3 = tpu.matmul %1, %2, %cst {dimension_numbers = #tpu.dot_dimension_numbers<[1], [0], [0], [1], [0, 0, 1, 1], [], []>} : vector<16x32xbf16>, vector<32x128xbf16>, vector<16x128xf32> -> vector<16x128xf32>
    %c0_3 = arith.constant 0 : index
    %c0_4 = arith.constant 0 : index
    %4 = vector.load %arg3[%c0_3, %c0_4] : memref<1x128xf32, #tpu.memory_space<vmem>>, vector<1x128xf32>
    %5 = vector.broadcast %4 : vector<1x128xf32> to vector<16x128xf32>
    %6 = arith.addf %3, %5 : vector<16x128xf32>
    %7 = arith.truncf %6 : vector<16x128xf32> to vector<16x128xbf16>
    %c0_5 = arith.constant 0 : index
    %c0_6 = arith.constant 0 : index
    %8 = vector.load %arg4[%c0_5, %c0_6] : memref<128x128xbf16, #tpu.memory_space<vmem>>, vector<128x128xbf16>
    %cst_7 = arith.constant dense<0.000000e+00> : vector<16x128xf32>
    %9 = tpu.matmul %7, %8, %cst_7 {dimension_numbers = #tpu.dot_dimension_numbers<[1], [0], [0], [1], [0, 0, 1, 1], [], []>} : vector<16x128xbf16>, vector<128x128xbf16>, vector<16x128xf32> -> vector<16x128xf32>
    %c0_8 = arith.constant 0 : index
    %c0_9 = arith.constant 0 : index
    %10 = vector.load %arg5[%c0_8, %c0_9] : memref<1x128xf32, #tpu.memory_space<vmem>>, vector<1x128xf32>
    %11 = vector.broadcast %10 : vector<1x128xf32> to vector<16x128xf32>
    %12 = arith.addf %9, %11 : vector<16x128xf32>
    %cst_10 = arith.constant 0.000000e+00 : f32
    %13 = vector.broadcast %cst_10 : f32 to vector<16x128xf32>
    %14 = arith.maximumf %12, %13 : vector<16x128xf32>
    %15 = arith.truncf %14 : vector<16x128xf32> to vector<16x128xbf16>
    %c0_11 = arith.constant 0 : index
    %c0_12 = arith.constant 0 : index
    %16 = vector.load %arg6[%c0_11, %c0_12] : memref<128x128xbf16, #tpu.memory_space<vmem>>, vector<128x128xbf16>
    %cst_13 = arith.constant dense<0.000000e+00> : vector<16x128xf32>
    %17 = tpu.matmul %15, %16, %cst_13 {dimension_numbers = #tpu.dot_dimension_numbers<[1], [0], [0], [1], [0, 0, 1, 1], [], []>} : vector<16x128xbf16>, vector<128x128xbf16>, vector<16x128xf32> -> vector<16x128xf32>
    %c0_14 = arith.constant 0 : index
    %c0_15 = arith.constant 0 : index
    %18 = vector.load %arg7[%c0_14, %c0_15] : memref<1x128xf32, #tpu.memory_space<vmem>>, vector<1x128xf32>
    %19 = vector.broadcast %18 : vector<1x128xf32> to vector<16x128xf32>
    %20 = arith.addf %17, %19 : vector<16x128xf32>
    %21 = arith.truncf %20 : vector<16x128xf32> to vector<16x128xbf16>
    %c0_16 = arith.constant 0 : index
    %c0_17 = arith.constant 0 : index
    %22 = vector.load %arg8[%c0_16, %c0_17] : memref<16x128xbf16, #tpu.memory_space<vmem>>, vector<16x128xbf16>
    tpu.vector_store %arg8[%c0_16, %c0_17], %21 {strides = array<i32>} : memref<16x128xbf16, #tpu.memory_space<vmem>>, vector<16x128xbf16>,
    return
  }
  func.func @transform_0(%arg0: i32) -> (i32, i32) {
    %c0_i32 = arith.constant 0 : i32
    %c0_i32_0 = arith.constant 0 : i32
    return %arg0, %c0_i32 : i32, i32
  }
  func.func @transform_1(%arg0: i32) -> (i32, i32) {
    %c0_i32 = arith.constant 0 : i32
    %c0_i32_0 = arith.constant 0 : i32
    %c0_i32_1 = arith.constant 0 : i32
    return %c0_i32, %c0_i32_0 : i32, i32
  }
  func.func @transform_2(%arg0: i32) -> (i32, i32) {
    %c0_i32 = arith.constant 0 : i32
    %c0_i32_0 = arith.constant 0 : i32
    %c0_i32_1 = arith.constant 0 : i32
    return %c0_i32, %c0_i32_0 : i32, i32
  }
  func.func @transform_3(%arg0: i32) -> (i32, i32) {
    %c0_i32 = arith.constant 0 : i32
    %c0_i32_0 = arith.constant 0 : i32
    %c0_i32_1 = arith.constant 0 : i32
    return %c0_i32, %c0_i32_0 : i32, i32
  }
  func.func @transform_4(%arg0: i32) -> (i32, i32) {
    %c0_i32 = arith.constant 0 : i32
    %c0_i32_0 = arith.constant 0 : i32
    %c0_i32_1 = arith.constant 0 : i32
    return %c0_i32, %c0_i32_0 : i32, i32
  }
  func.func @transform_5(%arg0: i32) -> (i32, i32) {
    %c0_i32 = arith.constant 0 : i32
    %c0_i32_0 = arith.constant 0 : i32
    %c0_i32_1 = arith.constant 0 : i32
    return %c0_i32, %c0_i32_0 : i32, i32
  }
  func.func @transform_6(%arg0: i32) -> (i32, i32) {
    %c0_i32 = arith.constant 0 : i32
    %c0_i32_0 = arith.constant 0 : i32
    %c0_i32_1 = arith.constant 0 : i32
    return %c0_i32, %c0_i32_0 : i32, i32
  }
  func.func @transform_7(%arg0: i32) -> (i32, i32) {
    %c0_i32 = arith.constant 0 : i32
    %c0_i32_0 = arith.constant 0 : i32
    return %arg0, %c0_i32 : i32, i32
  }
}

</mosaic_0001>

<bundles_post_ra>
// kernel: tpu_custom_call.1
= control target key start
LH: loop header
LB: loop body
LE: loop exit
PB: predicated region body
PF: predicated region fallthrough
CT: control target
= control target key end

     0   :  { %12 = vsyncpa [#allocation3], 0  ;;  %s821_s0 = inlined_call_operand.hbm [shape: f32[16,32], index: 0, kind: input, shape index: {}]   ;;  %s822_s1 = inlined_call_operand.hbm [shape: bf16[32,128], index: 1, kind: input, shape index: {}]   ;;  %s823_s2 = inlined_call_operand.vmem [shape: f32[1,128], index: 2, kind: input, shape index: {}]   ;;  %s824_s3 = inlined_call_operand.hbm [shape: bf16[128,128], index: 3, kind: input, shape index: {}]   ;;  %s825_s4 = inlined_call_operand.vmem [shape: f32[1,128], index: 4, kind: input, shape index: {}]   ;;  %s826_s5 = inlined_call_operand.hbm [shape: bf16[128,128], index: 5, kind: input, shape index: {}]   ;;  %s827_s6 = inlined_call_operand.vmem [shape: f32[1,128], index: 6, kind: input, shape index: {}]   ;;  %s828_s7 = inlined_call_operand.hbm [shape: bf16[16,128], index: 7, kind: output, shape index: {}]  }
   0x1   :  { %13 = vsyncpa [#allocation6], 0 }
   0x2   :  { %14 = vsyncpa [#allocation9], 0 }
   0x3   :  { %15 = vsyncpa [#allocation4], 0  ;;  %s658_s24 = smov [#allocation5]   ;;  %s540_s28 = scalar_lea.hbm %s822_s1, 256 }
   0x4   :  { %s33_s25 = sshll.u32 %s658_s24, 4  ;;  %p541_p0 = scmp.ne.s32.totalorder %s822_s1, %s540_s28  ;;  %s34_s25 = int_to_ptr.vmem [resolvable:$true] %s33_s25 }
   0x5   :  { %p544_p1 = scmp.lt.u32.totalorder %s540_s28, %s822_s1 }
   0x7   :  { %p546_p2 = pnand %p544_p1, %p541_p0 }
   0x9   :  { %549 = shalt.err (!%p546_p2)
}
   0xa   :  { %s550_s10 = scalar_lea.vmem %s34_s25, 256  ;;  %p555_p4 = scmp.lt.s32.totalorder %s34_s25, %s34_s25 }
   0xb   :  { %p551_p3 = scmp.ne.s32.totalorder %s34_s25, %s550_s10  ;;  %p556_p5 = scmp.lt.s32.totalorder %s550_s10, %s550_s10 }
   0xd   :  { %p557_p6 = por %p556_p5, %p555_p4 }
   0xf   :  { %p558_p7 = pnand %p557_p6, %p551_p3 }
  0x11   :  { %561 = shalt.err (!%p558_p7)
}
  0x12   :  { %s659_s11 = smov 64   ;;  %s660_s12 = smov 4  }
  0x13   :  { %39 = dma.hbm_to_vmem [thread:$0]  %s822_s1, 256, %s34_s25, [#allocation6], %s659_s11, %s659_s11, %s660_s12  }
  0x14   :  { %s661_s15 = smov [#allocation2]   ;;  %s562_s19 = scalar_lea.hbm %s821_s0, 256 }
  0x15   :  { %s21_s16 = sshll.u32 %s661_s15, 4  ;;  %p563_p8 = scmp.ne.s32.totalorder %s821_s0, %s562_s19  ;;  %s22_s16 = int_to_ptr.vmem [resolvable:$true] %s21_s16 }
  0x16   :  { %p566_p9 = scmp.lt.u32.totalorder %s562_s19, %s821_s0 }
  0x18   :  { %p568_p10 = pnand %p566_p9, %p563_p8 }
  0x1a   :  { %571 = shalt.err (!%p568_p10)
}
  0x1b   :  { %s572_s24 = scalar_lea.vmem %s22_s16, 256  ;;  %p577_p12 = scmp.lt.s32.totalorder %s22_s16, %s22_s16 }
  0x1c   :  { %p573_p11 = scmp.ne.s32.totalorder %s22_s16, %s572_s24  ;;  %p578_p13 = scmp.lt.s32.totalorder %s572_s24, %s572_s24 }
  0x1e   :  { %p579_p0 = por %p578_p13, %p577_p12 }
  0x20   :  { %p580_p1 = pnand %p579_p0, %p573_p11 }
  0x22   :  { %583 = shalt.err (!%p580_p1)
}
  0x23   :  { %s662_s1 = smov 128   ;;  %s663_s25 = smov 8  }
  0x24   :  { %27 = dma.hbm_to_vmem [thread:$0]  %s821_s0, 256, %s22_s16, [#allocation3], %s662_s1, %s662_s1, %s663_s25  }
  0x25   :  { %s664_s28 = smov [#allocation7]   ;;  %s665_s30 = smov [#allocation8]  }
  0x26   :  { %s47_s29 = sshll.u32 %s664_s28, 4  ;;  %s61_s8 = sshll.u32 %s665_s30, 4  ;;  %s48_s29 = int_to_ptr.vmem [resolvable:$true] %s47_s29  ;;  %s736_s8 = int_to_ptr.vmem [resolvable:$true] %s61_s8 }
  0x27   :  { %s584_s13 = scalar_lea.hbm %s824_s3, 1024 }
  0x28   :  { %p585_p2 = scmp.ne.s32.totalorder %s824_s3, %s584_s13  ;;  %p588_p3 = scmp.lt.u32.totalorder %s584_s13, %s824_s3 }
  0x2a   :  { %p590_p4 = pnand %p588_p3, %p585_p2 }
  0x2c   :  { %593 = shalt.err (!%p590_p4)
}
  0x2d   :  { %s594_s0 = scalar_lea.vmem %s48_s29, 1024  ;;  %p599_p6 = scmp.lt.s32.totalorder %s48_s29, %s48_s29 }
  0x2e   :  { %p595_p5 = scmp.ne.s32.totalorder %s48_s29, %s594_s0  ;;  %p600_p7 = scmp.lt.s32.totalorder %s594_s0, %s594_s0 }
  0x30   :  { %p601_p8 = por %p600_p7, %p599_p6 }
  0x32   :  { %p602_p9 = pnand %p601_p8, %p595_p5 }
  0x34   :  { %605 = shalt.err (!%p602_p9)
}
  0x35   :  { %53 = dma.hbm_to_vmem [thread:$0]  %s824_s3, 1024, %s48_s29, [#allocation6], %s659_s11, %s659_s11, %s660_s12  }
  0x36   :  { %s606_s22 = scalar_lea.hbm %s826_s5, 1024 }
  0x37   :  { %p607_p10 = scmp.ne.s32.totalorder %s826_s5, %s606_s22  ;;  %p610_p11 = scmp.lt.u32.totalorder %s606_s22, %s826_s5 }
  0x39   :  { %p612_p12 = pnand %p610_p11, %p607_p10 }
  0x3b   :  { %615 = shalt.err (!%p612_p12)
}
  0x3c   :  { %s616_s26 = scalar_lea.vmem %s736_s8, 1024  ;;  %p621_p0 = scmp.lt.s32.totalorder %s736_s8, %s736_s8 }
  0x3d   :  { %p617_p13 = scmp.ne.s32.totalorder %s736_s8, %s616_s26  ;;  %p622_p1 = scmp.lt.s32.totalorder %s616_s26, %s616_s26 }
  0x3f   :  { %p623_p2 = por %p622_p1, %p621_p0 }
  0x41   :  { %p624_p3 = pnand %p623_p2, %p617_p13 }
  0x43   :  { %627 = shalt.err (!%p624_p3)
}
  0x44   :  { %67 = dma.hbm_to_vmem [thread:$0]  %s826_s5, 1024, %s736_s8, [#allocation9], %s659_s11, %s659_s11, %s660_s12  }
  0x45   :  { %650 = dma.done.wait [#allocation3], 256  }
  0x46   :  { %651 = vsyncadd [#allocation3], 4294967040 }
  0x47   :  { %652 = dma.done.wait [#allocation6], 1280  }
  0x48   :  { %653 = vsyncadd [#allocation6], 4294966016 }
  0x49   :  { %654 = dma.done.wait [#allocation9], 1024  }
  0x4a   :  { %655 = vsyncadd [#allocation9], 4294966272  ;;  %v666_v0 = vmov 0.0   ;;  %vm667_vm0 = vmmov 0   ;;  %v522_v1 = vld [vmem:[#allocation5] sm:$0xff]   ;;  %v523_v2 = vld [vmem:[#allocation5 + $0x8] sm:$0xff]  }
  0x4b   :  { %463 = vmatprep.subr.bf16.mxu0 %v666_v0  ;;  %467 = vmatprep.mubr.msk.bf16.mxu0 %vm667_vm0, %v666_v0  ;;  %v83_v3 = vld [vmem:[#allocation2] sm:$0xff]  ;;  %v84_v4 = vld [vmem:[#allocation2 + $0x8] sm:$0xff]  ;;  %vm109_vm1 = vcmask 261120   ;;  %v526_v8 = vld [vmem:[#allocation7 + $0x10] sm:$0xff]   ;;  %s668_s9 = smov [#allocation10]  }
  0x4c   :  { %471 = vmatprep.subr.bf16.mxu1 %v666_v0  ;;  %487 = vmatprep.mubr.msk.bf16.mxu1 %vm667_vm0, %v666_v0  ;;  %v524_v5 = vld [vmem:[#allocation7] sm:$0xff]   ;;  %v85_v6 = vpack.c.bf16 %v84_v4, %v83_v3  ;;  %v525_v7 = vld [vmem:[#allocation7 + $0x8] sm:$0xff]   ;;  %v527_v9 = vld [vmem:[#allocation7 + $0x18] sm:$0xff]   ;;  %s397_s10 = sshll.u32 %s668_s9, 4  ;;  %s398_s10 = int_to_ptr.vmem [resolvable:$true] %s397_s10 }
  0x4d   :  { %464 = vmatpush3.bf16.msra.mxu0 %v522_v1  ;;  %472 = vmatpush3.bf16.msra.mxu1 %v524_v5  ;;  %v528_v10 = vld [vmem:[#allocation7 + $0x20] sm:$0xff]   ;;  %v529_v11 = vld [vmem:[#allocation7 + $0x28] sm:$0xff]   ;;  %v530_v12 = vld [vmem:[#allocation7 + $0x30] sm:$0xff]   ;;  %p633_p5 = scmp.lt.s32.totalorder %s398_s10, %s398_s10 }
  0x4e   :  { %465 = vmatprep.subr.bf16.mxu0 %v666_v0  ;;  %473 = vmatprep.subr.bf16.mxu1 %v666_v0  ;;  %v531_v13 = vld [vmem:[#allocation7 + $0x38] sm:$0xff]   ;;  %v532_v14 = vld [vmem:[#allocation8] sm:$0xff]   ;;  %v533_v15 = vld [vmem:[#allocation8 + $0x8] sm:$0xff]  }
  0x4f   :  { %v534_v16 = vld [vmem:[#allocation8 + $0x10] sm:$0xff]   ;;  %v535_v17 = vld [vmem:[#allocation8 + $0x18] sm:$0xff]   ;;  %v536_v18 = vld [vmem:[#allocation8 + $0x20] sm:$0xff]  }
  0x50   :  { %v537_v19 = vld [vmem:[#allocation8 + $0x28] sm:$0xff]   ;;  %v411_v20 = vld [vmem:[%s823_s2] ss:$0 sm:$0xff]  ;;  %v538_v28 = vld [vmem:[#allocation8 + $0x30] sm:$0xff]  }
  0x51   :  { %466 = vmatpush3.bf16.msra.mxu0 %v523_v2  ;;  %474 = vmatpush3.bf16.msra.mxu1 %v525_v7  ;;  %v539_v29 = vld [vmem:[#allocation8 + $0x38] sm:$0xff]   ;;  %v415_v30 = vld [vmem:[%s825_s4] ss:$0 sm:$0xff]  ;;  %s628_s4 = scalar_lea.vmem %s398_s10, 128 }
  0x52   :  { %491 = vmatprep.subr.bf16.mxu0 %v666_v0  ;;  %475 = vmatprep.subr.bf16.mxu1 %v666_v0  ;;  %v424_v40 = vld [vmem:[%s827_s6] ss:$0 sm:$0xff]  ;;  %p629_p4 = scmp.ne.s32.totalorder %s398_s10, %s628_s4  ;;  %p634_p6 = scmp.lt.s32.totalorder %s628_s4, %s628_s4 }
  0x54   :  { %468 = vmatmul.mubr.msk.bf16.vlgmr.msra.gmra.mrb[0].mxu0 %vm109_vm1, %v85_v6  ;;  %p635_p7 = por %p634_p6, %p633_p5 }
  0x55   :  { %507 = vmatprep.mubr.msk.bf16.mxu0 %vm667_vm0, %v666_v0  ;;  %476 = vmatpush3.bf16.msra.mxu1 %v526_v8 }
  0x56   :  { %477 = vmatprep.subr.bf16.mxu1 %v666_v0  ;;  %492 = vmatpush3.bf16.msra.mxu0 %v532_v14  ;;  %p636_p8 = pnand %p635_p7, %p629_p4 }
  0x57   :  { %493 = vmatprep.subr.bf16.mxu0 %v666_v0 }
  0x59   :  { %478 = vmatpush3.bf16.msra.mxu1 %v527_v9 }
  0x5a   :  { %479 = vmatprep.subr.bf16.mxu1 %v666_v0  ;;  %494 = vmatpush3.bf16.msra.mxu0 %v533_v15 }
  0x5b   :  { %495 = vmatprep.subr.bf16.mxu0 %v666_v0 }
  0x5d   :  { %480 = vmatpush3.bf16.msra.mxu1 %v528_v10 }
  0x5e   :  { %481 = vmatprep.subr.bf16.mxu1 %v666_v0  ;;  %496 = vmatpush3.bf16.msra.mxu0 %v534_v16 }
  0x5f   :  { %497 = vmatprep.subr.bf16.mxu0 %v666_v0 }
  0x61   :  { %482 = vmatpush3.bf16.msra.mxu1 %v529_v11 }
  0x62   :  { %483 = vmatprep.subr.bf16.mxu1 %v666_v0  ;;  %498 = vmatpush3.bf16.msra.mxu0 %v535_v17 }
  0x63   :  { %499 = vmatprep.subr.bf16.mxu0 %v666_v0 }
  0x65   :  { %484 = vmatpush3.bf16.msra.mxu1 %v530_v12 }
  0x66   :  { %485 = vmatprep.subr.bf16.mxu1 %v666_v0  ;;  %500 = vmatpush3.bf16.msra.mxu0 %v536_v18 }
  0x67   :  { %501 = vmatprep.subr.bf16.mxu0 %v666_v0 }
  0x69   :  { %486 = vmatpush3.bf16.msra.mxu1 %v531_v13 }
  0x6a   :  { %502 = vmatpush3.bf16.msra.mxu0 %v537_v19 }
  0x6b   :  { %503 = vmatprep.subr.bf16.mxu0 %v666_v0 }
  0x6e   :  { %504 = vmatpush3.bf16.msra.mxu0 %v538_v28 }
  0x6f   :  { %505 = vmatprep.subr.bf16.mxu0 %v666_v0 }
  0x72   :  { %506 = vmatpush3.bf16.msra.mxu0 %v539_v29 }
 0x127   :  { %v147_v21 = vpop.f32.mrb[0].mxu0 }
 0x128   :  { %v469_v22 = vpop.f32.mrb[1].mxu0  ;;  %v148_v24 = vadd.f32 %v411_v20, %v147_v21 }
 0x129   :  { %v150_v23 = vpop.f32.mrb[2].mxu0 }
 0x12a   :  { %v151_v25 = vadd.f32 %v411_v20, %v150_v23  ;;  %v470_v26 = vpop.f32.mrb[3].mxu0 }
 0x12c   :  { %v154_v27 = vpack.c.bf16 %v151_v25, %v148_v24 }
 0x12e   :  { %488 = vmatmul.mubr.bf16.vlgmr.msra.gmra.mrb[0].mxu1 %v154_v27 }
 0x201   :  { %v260_v31 = vpop.f32.mrb[0].mxu1 }
 0x202   :  { %v261_v32 = vadd.f32 %v415_v30, %v260_v31  ;;  %v489_v33 = vpop.f32.mrb[1].mxu1 }
 0x203   :  { %v263_v34 = vpop.f32.mrb[2].mxu1 }
 0x204   :  { %v264_v35 = vadd.f32 %v415_v30, %v263_v34  ;;  %v490_v36 = vpop.f32.mrb[3].mxu1  ;;  %v267_v37 = vmax.f32 %v261_v32, 0.0 }
 0x206   :  { %v268_v38 = vmax.f32 %v264_v35, 0.0 }
 0x208   :  { %v269_v39 = vpack.c.bf16 %v268_v38, %v267_v37 }
 0x20a   :  { %508 = vmatmul.mubr.bf16.vlgmr.msra.gmra.mrb[4].mxu0 %v269_v39 }
 0x2dd   :  { %v375_v41 = vpop.f32.mrb[4].mxu0 }
 0x2de   :  { %v509_v42 = vpop.f32.mrb[5].mxu0  ;;  %v376_v44 = vadd.f32 %v424_v40, %v375_v41 }
 0x2df   :  { %v378_v43 = vpop.f32.mrb[6].mxu0 }
 0x2e0   :  { %v379_v45 = vadd.f32 %v424_v40, %v378_v43  ;;  %v510_v46 = vpop.f32.mrb[7].mxu0 }
 0x2e2   :  { %v440_v47 = vpack.c.bf16 %v379_v45, %v376_v44 }
 0x2e4   :  { %441 = vst [vmem:[#allocation10] sm:$0xff] %v440_v47  }
 0x2e5   :  { %639 = shalt.err (!%p636_p8)
}
 0x2e6   :  { %s640_s14 = scalar_lea.hbm %s828_s7, 128 }
 0x2e7   :  { %p641_p9 = scmp.ne.s32.totalorder %s828_s7, %s640_s14  ;;  %p644_p10 = scmp.lt.u32.totalorder %s640_s14, %s828_s7 }
 0x2e9   :  { %p646_p11 = pnand %p644_p10, %p641_p9 }
 0x2eb   :  { %649 = shalt.err (!%p646_p11)
}
 0x2ec   :  { %403 = dma.vmem_to_hbm [thread:$0]  %s398_s10, 128, %s828_s7, [#allocation4], %s659_s11, %s659_s11, %s660_s12  }
 0x2ed   :  { %656 = dma.done.wait [#allocation4], 128  }
 0x2ee   :  { %657 = vsyncadd [#allocation4], 4294967168 }
 0x2ef   :  { %407 = vsyncpa [#allocation3], 1 }
 0x2f0   :  { %408 = vsyncpa [#allocation6], 1 }
 0x2f1   :  { %409 = vsyncpa [#allocation9], 1 }
 0x2f2   :  { %410 = vsyncpa [#allocation4], 1 }

</bundles_post_ra>
